<compile_context>
chip_gen: v7x
topology: tpu7x:2x2x1
jax: 0.10.0
libtpu: 0.0.40
codegen_flags: <defaults>
</compile_context>

<pallas_src>
import jax
import jax.numpy as jnp
from jax.experimental import pallas as pl
from jax.experimental.pallas import tpu as pltpu

TARGET_TILE_BYTES = 4 << 20                       # ~4 MiB tile, constant in bytes
_LANE_CANDIDATES = (1024, 896, 768, 640, 512, 384, 256, 128)


def _diff_augment_kernel(pb_ref, mag_ref, img_ref, out_ref):
    # pb_ref, mag_ref: (K,) scalars in SMEM
    # img_ref / out_ref: (tile_r, lane) tile in VMEM
    x = img_ref[...]
    adds = jnp.zeros((), dtype=jnp.float32)
    k = pb_ref.shape[0]
    for i in range(k):  # K is static -> unrolled; preserves sequential FP order
        sel = pb_ref[i] != jnp.zeros((), pb_ref.dtype)
        m32 = jnp.where(sel, mag_ref[i], jnp.zeros((), mag_ref.dtype)).astype(jnp.float32)
        x = x - m32.astype(x.dtype)      # no-op (x - 0.0) when entry disabled
        adds = adds + m32                # scalar chain accumulated in f32
    out_ref[...] = x + adds.astype(x.dtype)


def _jnp_forward(images, probability_b, magnitude):
    # Plain-jnp fallback / reference mirroring the PyTorch loop (same op order).
    x = images
    adds = jnp.zeros((), jnp.float32)
    for i in range(probability_b.shape[0]):
        m32 = jnp.where(probability_b[i] != 0.0, magnitude[i], 0.0).astype(jnp.float32)
        x = x - m32.astype(images.dtype)
        adds = adds + m32
    return x + adds.astype(images.dtype)


def _pick_lane(total):
    # Largest multiple of 128 (<= 1024) that evenly divides the element count
    # -> lane-dense, unmasked stores, and the reshape stays a zero-copy view.
    for lane in _LANE_CANDIDATES:
        if total % lane == 0:
            return lane
    return None


def _pick_tile_rows(rows, lane, itemsize):
    # Sublane multiple for the second-to-last block dim (8 f32 / 16 bf16 / 32 int8).
    sub = {4: 8, 2: 16, 1: 32}.get(itemsize, 8)
    target = max(sub, (TARGET_TILE_BYTES // (lane * itemsize)) // sub * sub)
    if rows <= target:
        return rows                      # single block == full array dims (legal)
    t = target                           # prefer an even divisor of rows
    while t >= sub:
        if rows % t == 0:
            return t
        t -= sub
    return target                        # ragged last block: OOB rows discarded (elementwise)


def differentiable_augment(images, probability_b, magnitude, *,
                           min_kernel_bytes=0, donate_images=False):
    """Forward pass of DifferentiableAugment as a streaming Pallas kernel.

    min_kernel_bytes: inputs smaller than this (or with no 128-multiple lane
    divisor) take the plain-jnp path -- recommended a few MiB in production so
    v7x never pays a grid=(1,) launch; default 0 keeps the kernel path for the
    demo below.
    donate_images: alias the image input to the output (requires the caller to
    donate `images`).
    """
    orig_shape = images.shape
    dtype = images.dtype
    itemsize = jnp.dtype(dtype).itemsize
    total = int(images.size)
    k = int(probability_b.shape[0])

    lane = _pick_lane(total)
    if lane is None or total * itemsize < min_kernel_bytes:
        return _jnp_forward(images, probability_b, magnitude)

    rows = total // lane
    tile_r = _pick_tile_rows(rows, lane, itemsize)
    grid = (pl.cdiv(rows, tile_r),)

    img2d = images.reshape(rows, lane)   # zero-copy view of contiguous input

    out2d = pl.pallas_call(
        _diff_augment_kernel,
        out_shape=jax.ShapeDtypeStruct((rows, lane), dtype),
        grid=grid,
        in_specs=[
            pl.BlockSpec(memory_space=pltpu.MemorySpace.SMEM),   # probability_b (K,)
            pl.BlockSpec(memory_space=pltpu.MemorySpace.SMEM),   # magnitude (K,)
            pl.BlockSpec((tile_r, lane), lambda i: (i, 0)),      # image tile
        ],
        out_specs=pl.BlockSpec((tile_r, lane), lambda i: (i, 0)),
        compiler_params=pltpu.CompilerParams(
            dimension_semantics=("parallel",),       # shard tiles across TCs (v7x)
            vmem_limit_bytes=32 << 20),              # 4x 4MiB tile fits on all gens
        cost_estimate=pl.CostEstimate(
            flops=(k + 1) * total,
            bytes_accessed=2 * total * itemsize,
            transcendentals=0),
        input_output_aliases=({2: 0} if donate_images else {}),
    )(probability_b, magnitude, img2d)

    return out2d.reshape(orig_shape)      # zero-copy view back to NCHW


if __name__ == "__main__":
    key = jax.random.PRNGKey(0)
    k_img, k_pb, k_mag = jax.random.split(key, 3)

    N, C, H, W = 2, 4, 16, 16     # small NCHW input
    K = 2                         # len(sub_policy): two ops per sub-policy

    images = jax.random.normal(k_img, (N, C, H, W), dtype=jnp.float32)
    # probability_b: sampled {0., 1.} selections; magnitude: scalar per policy op
    probability_b = jax.random.bernoulli(k_pb, 0.5, (K,)).astype(jnp.float32)
    magnitude = jax.random.uniform(k_mag, (K,), dtype=jnp.float32)

    out = differentiable_augment(images, probability_b, magnitude)
    out = jax.block_until_ready(out)

    ref = _jnp_forward(images, probability_b, magnitude)
    assert out.shape == images.shape and out.dtype == images.dtype
    assert jnp.allclose(out, ref, atol=0, rtol=0), "mismatch vs reference"

    print("KERNEL_OK")
</pallas_src>

<mosaic_0001>
module attributes {stable_mosaic.version = 11 : i64} {
  func.func @_diff_augment_kernel(%arg0: i32, %arg1: memref<2xf32, #tpu.memory_space<smem>>, %arg2: memref<2xf32, #tpu.memory_space<smem>>, %arg3: memref<2x1024xf32, #tpu.memory_space<vmem>>, %arg4: memref<2x1024xf32, #tpu.memory_space<vmem>>) attributes {dimension_semantics = [#tpu.dimension_semantics<parallel>], iteration_bounds = array<i64: 1>, scalar_prefetch = 0 : i64, scratch_operands = 0 : i64, tpu.core_type = #tpu.core_type<tc>, window_params = [{transform_indices = @transform_0, window_bounds = array<i64: 2>}, {transform_indices = @transform_1, window_bounds = array<i64: 2>}, {transform_indices = @transform_2, window_bounds = array<i64: 2, 1024>}, {transform_indices = @transform_3, window_bounds = array<i64: 2, 1024>}]} {
    %c0 = arith.constant 0 : index
    %c0_0 = arith.constant 0 : index
    %0 = vector.load %arg3[%c0, %c0_0] : memref<2x1024xf32, #tpu.memory_space<vmem>>, vector<2x1024xf32>
    %c0_1 = arith.constant 0 : index
    %1 = memref.load %arg1[%c0_1] : memref<2xf32, #tpu.memory_space<smem>>
    %cst = arith.constant 0.000000e+00 : f32
    %2 = arith.cmpf one, %1, %cst : f32
    %c0_2 = arith.constant 0 : index
    %3 = memref.load %arg2[%c0_2] : memref<2xf32, #tpu.memory_space<smem>>
    %cst_3 = arith.constant 0.000000e+00 : f32
    %4 = arith.select %2, %3, %cst_3 : f32
    %5 = vector.broadcast %4 : f32 to vector<2x1024xf32>
    %6 = arith.subf %0, %5 : vector<2x1024xf32>
    %cst_4 = arith.constant 0.000000e+00 : f32
    %7 = arith.addf %cst_4, %4 : f32
    %c1 = arith.constant 1 : index
    %8 = memref.load %arg1[%c1] : memref<2xf32, #tpu.memory_space<smem>>
    %cst_5 = arith.constant 0.000000e+00 : f32
    %9 = arith.cmpf one, %8, %cst_5 : f32
    %c1_6 = arith.constant 1 : index
    %10 = memref.load %arg2[%c1_6] : memref<2xf32, #tpu.memory_space<smem>>
    %cst_7 = arith.constant 0.000000e+00 : f32
    %11 = arith.select %9, %10, %cst_7 : f32
    %12 = vector.broadcast %11 : f32 to vector<2x1024xf32>
    %13 = arith.subf %6, %12 : vector<2x1024xf32>
    %14 = arith.addf %7, %11 : f32
    %15 = vector.broadcast %14 : f32 to vector<2x1024xf32>
    %16 = arith.addf %13, %15 : vector<2x1024xf32>
    %c0_8 = arith.constant 0 : index
    %c0_9 = arith.constant 0 : index
    %17 = vector.load %arg4[%c0_8, %c0_9] : memref<2x1024xf32, #tpu.memory_space<vmem>>, vector<2x1024xf32>
    tpu.vector_store %arg4[%c0_8, %c0_9], %16 {strides = array<i32>} : memref<2x1024xf32, #tpu.memory_space<vmem>>, vector<2x1024xf32>,
    return
  }
  func.func @transform_0(%arg0: i32) -> i32 {
    %c0_i32 = arith.constant 0 : i32
    %c0_i32_0 = arith.constant 0 : i32
    return %c0_i32 : i32
  }
  func.func @transform_1(%arg0: i32) -> i32 {
    %c0_i32 = arith.constant 0 : i32
    %c0_i32_0 = arith.constant 0 : i32
    return %c0_i32 : i32
  }
  func.func @transform_2(%arg0: i32) -> (i32, i32) {
    %c0_i32 = arith.constant 0 : i32
    %c0_i32_0 = arith.constant 0 : i32
    return %arg0, %c0_i32 : i32, i32
  }
  func.func @transform_3(%arg0: i32) -> (i32, i32) {
    %c0_i32 = arith.constant 0 : i32
    %c0_i32_0 = arith.constant 0 : i32
    return %arg0, %c0_i32 : i32, i32
  }
}

</mosaic_0001>

<bundles_post_ra>
// kernel: tpu_custom_call.1
= control target key start
LH: loop header
LB: loop body
LE: loop exit
PB: predicated region body
PF: predicated region fallthrough
CT: control target
= control target key end

     0   :  { %8 = vsyncpa [#allocation5], 0  ;;  %s233_s0 = inlined_call_operand.hbm [shape: f32[2], index: 0, kind: input, shape index: {}]   ;;  %s234_s1 = inlined_call_operand.vmem [shape: f32[2], index: 1, kind: input, shape index: {}]   ;;  %s235_s2 = inlined_call_operand.hbm [shape: f32[2,1024], index: 2, kind: input, shape index: {}]   ;;  %s236_s3 = inlined_call_operand.hbm [shape: f32[2,1024], index: 3, kind: output, shape index: {}]  }
   0x1   :  { %9 = vsyncpa [#allocation6], 0 }
   0x2   :  { %10 = vsyncpa [#allocation3], 0 }
   0x3   :  { %11 = vsyncpa [#allocation4], 0  ;;  %s26_s14 = sshll.u32 %s234_s1, 4  ;;  %s96_s17 = scalar_lea.hbm %s233_s0, 16  ;;  %s27_s14 = int_to_ptr.vmem [resolvable:$true] %s26_s14 }
   0x4   :  { %p97_p0 = scmp.ne.s32.totalorder %s233_s0, %s96_s17  ;;  %p100_p1 = scmp.lt.u32.totalorder %s96_s17, %s233_s0 }
   0x6   :  { %p102_p2 = pnand %p100_p1, %p97_p0 }
   0x8   :  { %105 = shalt.err (!%p102_p2)
}
   0x9   :  { %s170_s22 = smov [#allocation2]   ;;  %s106_s1 = scalar_lea.vmem %s27_s14, 16 }
   0xa   :  { %19 = dma.hbm_to_smem %s233_s0, 16, %s170_s22, [#allocation5]  }
   0xb   :  { %p107_p3 = scmp.ne.s32.totalorder %s27_s14, %s106_s1  ;;  %p111_p4 = scmp.lt.s32.totalorder %s27_s14, %s27_s14 }
   0xc   :  { %p112_p5 = scmp.lt.s32.totalorder %s106_s1, %s106_s1 }
   0xe   :  { %p113_p6 = por %p112_p5, %p111_p4 }
  0x10   :  { %p114_p7 = pnand %p113_p6, %p107_p3 }
  0x12   :  { %117 = shalt.err (!%p114_p7)
}
  0x13   :  { %s171_s25 = smov [#allocation7]   ;;  %s172_s26 = smov [#allocation8]  }
  0x14   :  { %29 = dma.vmem_to_smem %s27_s14, 16, %s171_s25, [#allocation6]  }
  0x15   :  { %s36_s27 = sshll.u32 %s172_s26, 4  ;;  %s118_s30 = scalar_lea.hbm %s235_s2, 256  ;;  %s37_s27 = int_to_ptr.vmem [resolvable:$true] %s36_s27 }
  0x16   :  { %p119_p8 = scmp.ne.s32.totalorder %s235_s2, %s118_s30  ;;  %p122_p9 = scmp.lt.u32.totalorder %s118_s30, %s235_s2 }
  0x18   :  { %p124_p10 = pnand %p122_p9, %p119_p8 }
  0x1a   :  { %127 = shalt.err (!%p124_p10)
}
  0x1b   :  { %s128_s7 = scalar_lea.vmem %s37_s27, 256  ;;  %p133_p12 = scmp.lt.s32.totalorder %s37_s27, %s37_s27 }
  0x1c   :  { %p129_p11 = scmp.ne.s32.totalorder %s37_s27, %s128_s7  ;;  %p134_p13 = scmp.lt.s32.totalorder %s128_s7, %s128_s7 }
  0x1e   :  { %p135_p0 = por %p134_p13, %p133_p12 }
  0x20   :  { %p136_p1 = pnand %p135_p0, %p129_p11 }
  0x22   :  { %139 = shalt.err (!%p136_p1)
}
  0x23   :  { %39 = dma.hbm_to_vmem [thread:$0]  %s235_s2, 256, %s37_s27, [#allocation3]  }
  0x24   :  { %162 = dma.done.wait [#allocation5], 16  }
  0x25   :  { %163 = vsyncadd [#allocation5], 4294967280 }
  0x26   :  { %164 = dma.done.wait [#allocation6], 16  }
  0x27   :  { %165 = vsyncadd [#allocation6], 4294967280 }
  0x28   :  { %166 = dma.done.wait [#allocation3], 256  }
  0x29   :  { %167 = vsyncadd [#allocation3], 4294967040 }
  0x2a   :  { %49 = sfence }
  0x2b   :  { %s52_s10 = sld [smem:[#allocation2]]  ;;  %s90_s12 = sld [smem:[#allocation2 + $0x1]]  ;;  %v50_v0 = vld [vmem:[#allocation8] sm:$0xff]  ;;  %v51_v1 = vld [vmem:[#allocation8 + $0x8] sm:$0xff] }
  0x2c   :  { %s54_s11 = sld [smem:[#allocation7]]  ;;  %s91_s13 = sld [smem:[#allocation7 + $0x1]] }
  0x2d   :  { %s173_s14 = smov [#allocation9]  }
  0x2e   :  { %s79_s15 = sshll.u32 %s173_s14, 4  ;;  %s80_s15 = int_to_ptr.vmem [resolvable:$true] %s79_s15 }
  0x2f   :  { %s140_s16 = scalar_lea.vmem %s80_s15, 256  ;;  %p145_p5 = scmp.lt.s32.totalorder %s80_s15, %s80_s15 }
  0x30   :  { %p141_p4 = scmp.ne.s32.totalorder %s80_s15, %s140_s16  ;;  %p146_p6 = scmp.lt.s32.totalorder %s140_s16, %s140_s16 }
  0x31   :  { %p53_p2 = scmp.ne.f32.partialorder %s52_s10, 0.0  ;;  %p61_p3 = scmp.ne.f32.partialorder %s90_s12, 0.0 }
  0x32   :  { %p147_p7 = por %p146_p6, %p145_p5 }
  0x33   :  { %s238_s11 = smov (!%p53_p2, %s54_s11), 0.0  ;;  %s240_s13 = smov (!%p61_p3, %s91_s13), 0.0 }
  0x34   :  { %v56_v2 = vstv %s238_s11  ;;  %v64_v4 = vstv %s240_s13  ;;  %s67_s2 = sadd.f32 %s240_s13, %s238_s11  ;;  %p148_p8 = pnand %p147_p7, %p141_p4 }
  0x35   :  { %v57_v3 = vsub.f32 %v50_v0, %v56_v2  ;;  %v58_v5 = vsub.f32 %v51_v1, %v56_v2 }
  0x36   :  { %v68_v7 = vstv %s67_s2 }
  0x37   :  { %v65_v6 = vsub.f32 %v57_v3, %v64_v4  ;;  %v66_v8 = vsub.f32 %v58_v5, %v64_v4 }
  0x39   :  { %v69_v9 = vadd.f32 %v68_v7, %v65_v6  ;;  %v70_v10 = vadd.f32 %v68_v7, %v66_v8 }
  0x3b   :  { %71 = vst [vmem:[#allocation9] sm:$0xff] %v69_v9  ;;  %72 = vst [vmem:[#allocation9 + $0x8] sm:$0xff] %v70_v10 }
  0x3c   :  { %151 = shalt.err (!%p148_p8)
}
  0x3d   :  { %s152_s19 = scalar_lea.hbm %s236_s3, 256 }
  0x3e   :  { %p153_p9 = scmp.ne.s32.totalorder %s236_s3, %s152_s19  ;;  %p156_p10 = scmp.lt.u32.totalorder %s152_s19, %s236_s3 }
  0x40   :  { %p158_p11 = pnand %p156_p10, %p153_p9 }
  0x42   :  { %161 = shalt.err (!%p158_p11)
}
  0x43   :  { %82 = dma.vmem_to_hbm [thread:$0]  %s80_s15, 256, %s236_s3, [#allocation4]  }
  0x44   :  { %168 = dma.done.wait [#allocation4], 256  }
  0x45   :  { %169 = vsyncadd [#allocation4], 4294967040 }
  0x46   :  { %86 = vsyncpa [#allocation3], 1 }
  0x47   :  { %87 = vsyncpa [#allocation4], 1 }
  0x48   :  { %88 = vsyncpa [#allocation5], 1 }
  0x49   :  { %89 = vsyncpa [#allocation6], 1 }

</bundles_post_ra>
